<compile_context>
chip_gen: v5e
topology: v5e:2x2
jax: 0.10.0
libtpu: 0.0.40
codegen_flags: <defaults>
</compile_context>

<pallas_src>
import functools

import jax
import jax.numpy as jnp
import numpy as np
from jax.experimental import pallas as pl
from jax.experimental.pallas import tpu as pltpu

_HAS_PL_RECIP = hasattr(pl, "reciprocal")


def _round_up(x, m):
    return (x + m - 1) // m * m


def _vmem_limit_bytes():
    # Generation-aware scoped-VMEM budget: ~3/4 of physical VMEM
    # (v5e/v6e: 128 MiB -> 96 MiB, v7x: 64 MiB -> 48 MiB). Conservative
    # fallback if the query is unavailable.
    cap = 64 * 1024 * 1024
    try:
        info = pltpu.get_tpu_info()
        cap = int(getattr(info, "vmem_capacity_bytes", cap))
    except Exception:
        pass
    return min((cap * 3) // 4, 100 * 1024 * 1024)


# ----------------------------------------------------------------------------
# Projection kernels (row-tiled; weight/bias blocks are grid-invariant)
# ----------------------------------------------------------------------------
def _linear_kernel(x_ref, w_ref, b_ref, o_ref):
    # bf16 operands on the MXU, f32 accumulation; bias add in f32.
    y = jnp.dot(x_ref[...].astype(jnp.bfloat16), w_ref[...],
                preferred_element_type=jnp.float32)
    o_ref[...] = (y + b_ref[...]).astype(o_ref.dtype)


def _value_mlp_kernel(x_ref, w1_ref, b1_ref, w2_ref, b2_ref, o_ref):
    # Fused Linear -> ReLU -> Linear: hidden activation never leaves VMEM/vregs.
    hid = jnp.dot(x_ref[...].astype(jnp.bfloat16), w1_ref[...],
                  preferred_element_type=jnp.float32)
    hid = jnp.maximum(hid + b1_ref[...], 0.0)
    y = jnp.dot(hid.astype(jnp.bfloat16), w2_ref[...],
                preferred_element_type=jnp.float32)
    o_ref[...] = (y + b2_ref[...]).astype(o_ref.dtype)


def _row_tiled_call(kernel, x, weights_and_biases, e_out, out_dtype,
                    *, block_rows, vmem_limit):
    n, e_in = x.shape
    tn = min(block_rows, _round_up(n, 8))     # tn is always a multiple of 8
    grid = (pl.cdiv(n, tn),)                  # edge tile handled by masked store

    in_specs = [pl.BlockSpec((tn, e_in), lambda i: (i, 0))]
    args = [x]
    for w, bias in weights_and_biases:
        in_specs.append(pl.BlockSpec(w.shape, lambda i: (0, 0)))
        in_specs.append(pl.BlockSpec((1, bias.shape[0]), lambda i: (0, 0)))
        args.append(w.astype(jnp.bfloat16))   # resident bf16 weights
        args.append(bias.reshape(1, -1))      # bias stays f32

    return pl.pallas_call(
        kernel,
        out_shape=jax.ShapeDtypeStruct((n, e_out), out_dtype),
        grid=grid,
        in_specs=in_specs,
        out_specs=pl.BlockSpec((tn, e_out), lambda i: (i, 0)),
        compiler_params=pltpu.CompilerParams(
            dimension_semantics=("parallel",),
            vmem_limit_bytes=vmem_limit),
    )(*args)


def linear_pallas(x, w, b, *, vmem_limit, block_rows=1024):
    return _row_tiled_call(_linear_kernel, x, [(w, b)], w.shape[1],
                           jnp.float32, block_rows=block_rows,
                           vmem_limit=vmem_limit)


def value_mlp_pallas(x, w1, b1, w2, b2, *, vmem_limit, block_rows=1024):
    # bf16 output: halves HBM traffic + the resident attention block.
    return _row_tiled_call(_value_mlp_kernel, x, [(w1, b1), (w2, b2)],
                           w2.shape[1], jnp.bfloat16, block_rows=block_rows,
                           vmem_limit=vmem_limit)


# ----------------------------------------------------------------------------
# Attention kernel: one (q_tile, batch) pair per grid point, all heads inside,
# pairwise values consumed in their natural (Lq, Lk, E) layout.
# ----------------------------------------------------------------------------
def _attention_kernel(*refs, num_heads, head_dim, has_mask, mask_per_head,
                      lk_chunk):
    if has_mask:
        q_ref, k_ref, m_ref, v_ref, o_ref = refs
    else:
        q_ref, k_ref, v_ref, o_ref = refs
        m_ref = None

    d = head_dim
    eps2 = 1e-24                              # F.normalize eps ** 2
    q = q_ref[0]                              # (tLq, E) f32
    k = k_ref[0]                              # (Lk,  E) f32
    tlq = q.shape[0]
    lk = k.shape[0]

    ctx_parts = []
    # TODO(synk): for large H, promote heads to a grid axis instead of this
    # static unroll (shrinks the resident pairwise block by H on v7x).
    for h in range(num_heads):
        qh = q[:, h * d:(h + 1) * d]
        kh = k[:, h * d:(h + 1) * d]
        # F.normalize(p=2): x / max(||x||, eps) == x * rsqrt(max(||x||^2, eps^2))
        qn = qh * jax.lax.rsqrt(
            jnp.maximum(jnp.sum(qh * qh, axis=-1, keepdims=True), eps2))
        kn = kh * jax.lax.rsqrt(
            jnp.maximum(jnp.sum(kh * kh, axis=-1, keepdims=True), eps2))

        # scores = (mask +) qn @ kn^T : bf16 MXU operands, f32 accumulation.
        scores = jax.lax.dot_general(
            qn.astype(jnp.bfloat16), kn.astype(jnp.bfloat16),
            (((1,), (1,)), ((), ())),
            preferred_element_type=jnp.float32)              # (tLq, Lk)
        if has_mask:
            m = m_ref[0, h] if mask_per_head else m_ref[0, 0]
            scores = scores + m

        # Numerically stable softmax over keys (f32 elementwise, v5e-safe).
        # NOTE: a fully masked (-inf) row yields NaN probs, matching PyTorch.
        scores = scores - jnp.max(scores, axis=-1, keepdims=True)
        p = jnp.exp(scores)
        denom = jnp.sum(p, axis=-1, keepdims=True)
        if _HAS_PL_RECIP:
            p = p * pl.reciprocal(denom, approx=True)        # EUP slot
        else:
            p = p / denom

        # ctx_h[i, c] = sum_j p[i, j] * v[i, j, h*D + c]
        # chunked along Lk so the (tLq, chunk, D) multiply intermediate stays
        # bounded (no vreg/VMEM blow-up at realistic Lk).
        ctx_h = jnp.zeros((tlq, d), jnp.float32)
        for j0 in range(0, lk, lk_chunk):
            j1 = min(j0 + lk_chunk, lk)
            pj = p[:, j0:j1]
            vj = v_ref[:, j0:j1, h * d:(h + 1) * d].astype(jnp.float32)
            ctx_h = ctx_h + jnp.sum(pj[:, :, None] * vj, axis=1)
        ctx_parts.append(ctx_h)

    # Single lane-dense (tLq, E) store per grid point (all heads at once).
    o_ref[0] = jnp.concatenate(ctx_parts, axis=-1).astype(o_ref.dtype)


def _choose_tlq(lq, lk, e, num_heads, vh_itemsize, vmem_limit, q_block):
    """Largest q tile (multiple of 8, <= q_block) fitting a ~70% VMEM budget."""
    d = e // num_heads
    tlq = min(q_block, _round_up(lq, 8))

    def footprint(t):
        vh = 2 * t * lk * e * vh_itemsize            # pairwise block (2 buffers)
        qko = 2 * (t * e + lk * e + t * e) * 4       # q, k, out blocks
        mask = 2 * num_heads * t * lk * 4            # worst case per-head mask
        live = t * lk * d * 4 + num_heads * t * lk * 4  # chunk product + probs
        return vh + qko + mask + live

    while tlq > 8 and footprint(tlq) > (vmem_limit * 7) // 10:
        tlq = max(8, (tlq // 2 // 8) * 8)
    return tlq


def attention_pallas(qb, kb, vq, attn_mask, num_heads, *, q_block=128,
                     vmem_limit=None):
    """qb: (B, Lq, E) f32, kb: (B, Lk, E) f32, vq: (Lq, Lk, E) (bf16 preferred)."""
    if vmem_limit is None:
        vmem_limit = _vmem_limit_bytes()
    b, lq, e = qb.shape
    lk = kb.shape[1]
    d = e // num_heads
    vh_itemsize = jnp.dtype(vq.dtype).itemsize

    tlq = _choose_tlq(lq, lk, e, num_heads, vh_itemsize, vmem_limit, q_block)
    grid = (pl.cdiv(lq, tlq), b)
    lk_chunk = min(lk, 512)

    in_specs = [
        pl.BlockSpec((1, tlq, e), lambda qi, bi: (bi, qi, 0)),   # q
        pl.BlockSpec((1, lk, e), lambda qi, bi: (bi, 0, 0)),     # k
    ]
    args = [qb, kb]

    has_mask = attn_mask is not None
    mask_per_head = False
    if has_mask:
        am = attn_mask
        if am.dtype == jnp.bool_:
            am = jnp.where(am, -jnp.inf, 0.0)
        am = am.astype(jnp.float32)
        if am.ndim == 2:
            am = am[None]
        if am.shape[0] == 1:
            # shared across batch & heads: broadcast via index_map, never
            # materialized at (B*H, Lq, Lk).
            am4 = jnp.broadcast_to(am, (1, lq, lk))[None]        # (1,1,Lq,Lk)
            mask_spec = pl.BlockSpec((1, 1, tlq, lk),
                                     lambda qi, bi: (0, 0, qi, 0))
        elif am.shape[0] == b * num_heads:
            am4 = jnp.broadcast_to(am, (b * num_heads, lq, lk)).reshape(
                b, num_heads, lq, lk)
            mask_per_head = True
            mask_spec = pl.BlockSpec((1, num_heads, tlq, lk),
                                     lambda qi, bi: (bi, 0, qi, 0))
        else:
            raise ValueError(
                f"attn_mask leading dim must be 1 or B*H={b * num_heads}, "
                f"got {am.shape}")
        in_specs.append(mask_spec)
        args.append(am4)

    # Pairwise values (dominant tensor), natural (Lq, Lk, E) layout: block index
    # depends only on the OUTER qi axis -> resident across the inner batch loop.
    # TODO(synk): pipeline_mode=pl.Buffered(1) would halve its VMEM footprint.
    in_specs.append(pl.BlockSpec((tlq, lk, e), lambda qi, bi: (qi, 0, 0)))
    args.append(vq)

    kernel = functools.partial(_attention_kernel, num_heads=num_heads,
                               head_dim=d, has_mask=has_mask,
                               mask_per_head=mask_per_head, lk_chunk=lk_chunk)
    return pl.pallas_call(
        kernel,
        out_shape=jax.ShapeDtypeStruct((b, lq, e), jnp.float32),
        grid=grid,
        in_specs=in_specs,
        out_specs=pl.BlockSpec((1, tlq, e), lambda qi, bi: (bi, qi, 0)),
        compiler_params=pltpu.CompilerParams(
            # qi "parallel" so a v7x megacore split owns disjoint pairwise
            # slabs; bi "arbitrary" keeps the resident-vh inner loop on a core.
            dimension_semantics=("parallel", "arbitrary"),
            vmem_limit_bytes=vmem_limit),
    )(*args)


# ----------------------------------------------------------------------------
# Module forward (glue + kernels)
# ----------------------------------------------------------------------------
def mot_self_attention_forward(params, q, k, v, attn_mask, num_heads,
                               q_block=128):
    lq, b, e = q.shape
    lk = k.shape[0]
    assert e % num_heads == 0
    vmem_limit = _vmem_limit_bytes()

    # Projections: query/key = single Linear; value = fused Linear->ReLU->Linear
    # emitting bf16 in the natural (Lq, Lk, E) layout (no transpose, no pad).
    mixed_q = linear_pallas(q.reshape(-1, e), params["wq"], params["bq"],
                            vmem_limit=vmem_limit).reshape(lq, b, e)
    mixed_k = linear_pallas(k.reshape(-1, e), params["wk"], params["bk"],
                            vmem_limit=vmem_limit).reshape(lk, b, e)
    lv0, lv1, _ = v.shape
    mixed_v = value_mlp_pallas(v.reshape(-1, e), params["wv1"], params["bv1"],
                               params["wv2"], params["bv2"],
                               vmem_limit=vmem_limit).reshape(lv0, lv1, e)
    if (lv0, lv1) != (lq, lk):
        mixed_v = jnp.broadcast_to(mixed_v, (lq, lk, e))

    # (L, B, E) -> (B, L, E): cheap O(L*B*E); the pairwise tensor is untouched.
    qb = mixed_q.transpose(1, 0, 2)
    kb = mixed_k.transpose(1, 0, 2)

    ctx = attention_pallas(qb, kb, mixed_v, attn_mask, num_heads,
                           q_block=q_block, vmem_limit=vmem_limit)  # (B,Lq,E)
    out = ctx.transpose(1, 0, 2)                                    # (Lq,B,E)
    return out, mixed_q, mixed_k


# ----------------------------------------------------------------------------
# Pure-JAX reference (mirrors the PyTorch forward op-for-op, all f32)
# ----------------------------------------------------------------------------
def reference_forward(params, q, k, v, attn_mask, num_heads):
    lq, b, e = q.shape
    lk = k.shape[0]
    d = e // num_heads
    mixed_q = q @ params["wq"] + params["bq"]
    mixed_k = k @ params["wk"] + params["bk"]
    hid = jnp.maximum(v @ params["wv1"] + params["bv1"], 0.0)
    mixed_v = hid @ params["wv2"] + params["bv2"]

    def t_scores(x):
        l, bb, _ = x.shape
        return x.reshape(l, bb, num_heads, d).transpose(1, 2, 0, 3).reshape(
            bb * num_heads, l, d)

    def l2n(x):
        return x / jnp.maximum(jnp.linalg.norm(x, axis=-1, keepdims=True), 1e-12)

    ql = l2n(t_scores(mixed_q))
    kl = l2n(t_scores(mixed_k))
    vl = mixed_v.reshape(1, mixed_v.shape[0], mixed_v.shape[1], num_heads,
                         d).transpose(0, 3, 1, 2, 4)

    am = attn_mask
    if am is None:
        am = jnp.zeros((b * num_heads, lq, lk), jnp.float32)
    elif am.dtype == jnp.bool_:
        am = jnp.where(am, -jnp.inf, 0.0).astype(jnp.float32)
    scores = am + jnp.einsum("bqd,bkd->bqk", ql, kl)
    probs = jax.nn.softmax(scores, axis=-1)
    probs = probs.reshape((b, num_heads) + probs.shape[1:])
    ctx = (probs[..., None] * vl).sum(axis=-2)
    ctx = ctx.transpose(2, 0, 1, 3).reshape(lq, b, e)
    return ctx, mixed_q, mixed_k


# ----------------------------------------------------------------------------
# Deterministic parameter init (shapes from MOTSelfAttention.__init__)
# ----------------------------------------------------------------------------
def init_params(key, embed_dim):
    ks = jax.random.split(key, 6)
    s = 0.05
    f32 = jnp.float32
    return {
        # weights stored as (in, out) == PyTorch Linear weight transposed
        "wq": s * jax.random.normal(ks[0], (embed_dim, embed_dim), f32),
        "bq": s * jax.random.normal(ks[1], (embed_dim,), f32),
        "wk": s * jax.random.normal(ks[2], (embed_dim, embed_dim), f32),
        "bk": s * jax.random.normal(ks[3], (embed_dim,), f32),
        "wv1": s * jax.random.normal(ks[4], (embed_dim, embed_dim), f32),
        "bv1": jnp.zeros((embed_dim,), f32),
        "wv2": s * jax.random.normal(ks[5], (embed_dim, embed_dim), f32),
        "bv2": jnp.zeros((embed_dim,), f32),
    }


if __name__ == "__main__":
    key = jax.random.PRNGKey(0)
    embed_dim, num_heads = 32, 4
    lq = lk = 8
    bs = 2

    keys = jax.random.split(key, 5)
    q = jax.random.normal(keys[0], (lq, bs, embed_dim), jnp.float32)
    k = jax.random.normal(keys[1], (lk, bs, embed_dim), jnp.float32)
    v = jax.random.normal(keys[2], (lq, lk, embed_dim), jnp.float32)
    attn_mask = 0.1 * jax.random.normal(keys[3], (bs * num_heads, lq, lk),
                                        jnp.float32)
    params = init_params(keys[4], embed_dim)

    # with an additive float mask (per batch*head)
    out, mq, mk = mot_self_attention_forward(params, q, k, v, attn_mask,
                                             num_heads)
    jax.block_until_ready((out, mq, mk))
    ref_out, ref_mq, ref_mk = reference_forward(params, q, k, v, attn_mask,
                                                num_heads)
    np.testing.assert_allclose(np.asarray(mq), np.asarray(ref_mq),
                               rtol=1e-2, atol=1e-2)
    np.testing.assert_allclose(np.asarray(mk), np.asarray(ref_mk),
                               rtol=1e-2, atol=1e-2)
    np.testing.assert_allclose(np.asarray(out), np.asarray(ref_out),
                               rtol=1e-2, atol=1e-2)

    # without a mask (exercises the mask-free kernel variant)
    out2, _, _ = mot_self_attention_forward(params, q, k, v, None, num_heads)
    jax.block_until_ready(out2)
    ref_out2, _, _ = reference_forward(params, q, k, v, None, num_heads)
    np.testing.assert_allclose(np.asarray(out2), np.asarray(ref_out2),
                               rtol=1e-2, atol=1e-2)

    print("KERNEL_OK")
</pallas_src>

<mosaic_0001>
module attributes {stable_mosaic.version = 11 : i64} {
  func.func @_linear_kernel(%arg0: i32, %arg1: memref<16x32xf32, #tpu.memory_space<vmem>>, %arg2: memref<32x32xbf16, #tpu.memory_space<vmem>>, %arg3: memref<1x32xf32, #tpu.memory_space<vmem>>, %arg4: memref<16x32xf32, #tpu.memory_space<vmem>>) attributes {dimension_semantics = [#tpu.dimension_semantics<parallel>], iteration_bounds = array<i64: 1>, scalar_prefetch = 0 : i64, scratch_operands = 0 : i64, tpu.core_type = #tpu.core_type<tc>, window_params = [{transform_indices = @transform_0, window_bounds = array<i64: 16, 32>}, {pipeline_mode = #tpu.pipeline_mode<synchronous>, transform_indices = @transform_1, window_bounds = array<i64: 32, 32>}, {pipeline_mode = #tpu.pipeline_mode<synchronous>, transform_indices = @transform_2, window_bounds = array<i64: 1, 32>}, {transform_indices = @transform_3, window_bounds = array<i64: 16, 32>}]} {
    %c0 = arith.constant 0 : index
    %c0_0 = arith.constant 0 : index
    %0 = vector.load %arg1[%c0, %c0_0] : memref<16x32xf32, #tpu.memory_space<vmem>>, vector<16x32xf32>
    %1 = arith.truncf %0 : vector<16x32xf32> to vector<16x32xbf16>
    %c0_1 = arith.constant 0 : index
    %c0_2 = arith.constant 0 : index
    %2 = vector.load %arg2[%c0_1, %c0_2] : memref<32x32xbf16, #tpu.memory_space<vmem>>, vector<32x32xbf16>
    %cst = arith.constant dense<0.000000e+00> : vector<16x32xf32>
    %3 = tpu.matmul %1, %2, %cst {dimension_numbers = #tpu.dot_dimension_numbers<[1], [0], [0], [1], [0, 0, 1, 1], [], []>} : vector<16x32xbf16>, vector<32x32xbf16>, vector<16x32xf32> -> vector<16x32xf32>
    %c0_3 = arith.constant 0 : index
    %c0_4 = arith.constant 0 : index
    %4 = vector.load %arg3[%c0_3, %c0_4] : memref<1x32xf32, #tpu.memory_space<vmem>>, vector<1x32xf32>
    %5 = vector.broadcast %4 : vector<1x32xf32> to vector<16x32xf32>
    %6 = arith.addf %3, %5 : vector<16x32xf32>
    %c0_5 = arith.constant 0 : index
    %c0_6 = arith.constant 0 : index
    %7 = vector.load %arg4[%c0_5, %c0_6] : memref<16x32xf32, #tpu.memory_space<vmem>>, vector<16x32xf32>
    tpu.vector_store %arg4[%c0_5, %c0_6], %6 {strides = array<i32>} : memref<16x32xf32, #tpu.memory_space<vmem>>, vector<16x32xf32>,
    return
  }
  func.func @transform_0(%arg0: i32) -> (i32, i32) {
    %c0_i32 = arith.constant 0 : i32
    %c0_i32_0 = arith.constant 0 : i32
    return %arg0, %c0_i32 : i32, i32
  }
  func.func @transform_1(%arg0: i32) -> (i32, i32) {
    %c0_i32 = arith.constant 0 : i32
    %c0_i32_0 = arith.constant 0 : i32
    %c0_i32_1 = arith.constant 0 : i32
    return %c0_i32, %c0_i32_0 : i32, i32
  }
  func.func @transform_2(%arg0: i32) -> (i32, i32) {
    %c0_i32 = arith.constant 0 : i32
    %c0_i32_0 = arith.constant 0 : i32
    %c0_i32_1 = arith.constant 0 : i32
    return %c0_i32, %c0_i32_0 : i32, i32
  }
  func.func @transform_3(%arg0: i32) -> (i32, i32) {
    %c0_i32 = arith.constant 0 : i32
    %c0_i32_0 = arith.constant 0 : i32
    return %arg0, %c0_i32 : i32, i32
  }
}

</mosaic_0001>

<bundles_post_ra>
// kernel: tpu_custom_call.1
= control target key start
LH: loop header
LB: loop body
LE: loop exit
PB: predicated region body
PF: predicated region fallthrough
CT: control target
= control target key end

     0   :  { %8 = vsyncpa [#allocation3], 0  ;;  %s253_s0 = inlined_call_operand.hbm [shape: f32[16,32], index: 0, kind: input, shape index: {}]   ;;  %s254_s1 = inlined_call_operand.hbm [shape: bf16[32,32], index: 1, kind: input, shape index: {}]   ;;  %s255_s2 = inlined_call_operand.vmem [shape: f32[1,32], index: 2, kind: input, shape index: {}]   ;;  %s256_s3 = inlined_call_operand.hbm [shape: f32[16,32], index: 3, kind: output, shape index: {}]  }
   0x1   :  { %9 = vsyncpa [#allocation6], 0 }
   0x2   :  { %10 = vsyncpa [#allocation4], 0  ;;  %s15_s14 = sshll.u32 %s253_s0, 4  ;;  %s208_s15 = smov [#allocation2]   ;;  %s16_s14 = int_to_ptr.hbm [resolvable:$true] %s15_s14 }
   0x3   :  { %s17_s16 = sshll.u32 %s208_s15, 4  ;;  %s28_s19 = sshll.u32 %s254_s1, 4  ;;  %s18_s16 = int_to_ptr.vmem [resolvable:$true] %s17_s16  ;;  %s29_s19 = int_to_ptr.hbm [resolvable:$true] %s28_s19 }
   0x4   :  { %s209_s20 = smov 128   ;;  %s210_s21 = smov 8  }
   0x5   :  { %23 = dma.hbm_to_vmem [thread:$0]  %s16_s14, 256, %s18_s16, [#allocation3], %s209_s20, %s209_s20, %s210_s21  }
   0x6   :  { %s211_s22 = smov [#allocation5]   ;;  %s212_s24 = smov 64  }
   0x7   :  { %s30_s23 = sshll.u32 %s211_s22, 4  ;;  %s213_s0 = smov 4   ;;  %s31_s23 = int_to_ptr.vmem [resolvable:$true] %s30_s23 }
   0x8   :  { %36 = dma.hbm_to_vmem [thread:$0]  %s29_s19, 256, %s31_s23, [#allocation6], %s212_s24, %s212_s24, %s213_s0  }
   0x9   :  { %202 = dma.done.wait [#allocation3], 256  }
   0xa   :  { %203 = vsyncadd [#allocation3], 4294967040 }
   0xb   :  { %204 = dma.done.wait [#allocation6], 256  }
   0xc   :  { %205 = vsyncadd [#allocation6], 4294967040  ;;  %v121_v0 = vld [vmem:[#allocation5 + $0x8] sm:$0xff]  ;;  %v120_v1 = vld [vmem:[#allocation5] sm:$0xff]  ;;  %vm71_vm0 = vcmask 261120   ;;  %s214_s26 = smov [#allocation7]  }
   0xd   :  { %81 = vmatpush.bf16.msra.mxu0 %v121_v0  ;;  %v48_v2 = vld [vmem:[#allocation2] sm:$0xff]  ;;  %v49_v3 = vld [vmem:[#allocation2 + $0x8] sm:$0xff]  ;;  %s95_s27 = sshll.u32 %s214_s26, 4  ;;  %s97_s30 = sshll.u32 %s256_s3, 4  ;;  %s96_s27 = int_to_ptr.vmem [resolvable:$true] %s95_s27  ;;  %s98_s30 = int_to_ptr.hbm [resolvable:$true] %s97_s30 }
   0xe   :  { %v50_v4 = vpack.c.bf16 %v49_v3, %v48_v2  ;;  %v129_v5 = vld [vmem:[%s255_s2] ss:$0 sm:$0xff] }
  0x11   :  { %82 = vmatpush.bf16.msra.mxu0 %v120_v1 }
  0x14   :  { %119 = vmatmul.msk.bf16.vlgmr.msra.gmra.mxu0 %vm71_vm0, %v50_v4 }
  0x91   :  { %v84_v6 = vpop.f32.mrf.mxu0 }
  0x92   :  { %v85_v7 = vadd.f32 %v129_v5, %v84_v6 }
  0x94   :  { %89 = vst.msk [vmem:[#allocation7] sm:$0xff] %vm71_vm0, %v85_v7 }
  0x99   :  { %v86_v8 = vpop.f32.mrf.mxu0 }
  0x9a   :  { %v87_v9 = vadd.f32 %v129_v5, %v86_v8 }
  0x9c   :  { %90 = vst.msk [vmem:[#allocation7 + $0x8] sm:$0xff] %vm71_vm0, %v87_v9 }
  0x9d   :  { %103 = dma.vmem_to_hbm [thread:$0]  %s96_s27, 256, %s98_s30, [#allocation4], %s209_s20, %s209_s20, %s210_s21  }
  0x9e   :  { %206 = dma.done.wait [#allocation4], 256  }
  0x9f   :  { %207 = vsyncadd [#allocation4], 4294967040 }
  0xa0   :  { %108 = vsyncpa [#allocation3], 1 }
  0xa1   :  { %109 = vsyncpa [#allocation6], 1 }
  0xa2   :  { %110 = vsyncpa [#allocation4], 1 }

</bundles_post_ra>
